<compile_context>
chip_gen: v6e
topology: v6e:2x2x1
jax: 0.10.0
libtpu: 0.0.40
codegen_flags: <defaults>
</compile_context>

<pallas_src>
from functools import partial

import jax
import jax.numpy as jnp
from jax.experimental import pallas as pl
from jax.experimental.pallas import tpu as pltpu

LANES = 128  # lane width of a vreg


def value_kernel(xT_ref, w1T_ref, b1_ref, w2T_ref, b2_ref, w3T_ref, b3_ref, o_ref):
    # x^T tile: (D, tb) f32 -> bf16 cast in-kernel (free VPU slack, no wrapper pass)
    xT = xT_ref[...].astype(w1T_ref.dtype)
    # layer 1: (64, D) @ (D, tb) -> (64, tb), f32 accumulate; bias+relu in f32
    h = jnp.dot(w1T_ref[...], xT, preferred_element_type=jnp.float32)
    h = jnp.maximum(h + b1_ref[...], 0.0)
    # layer 2: (64, 64) @ (64, tb)
    h = jnp.dot(w2T_ref[...], h.astype(w2T_ref.dtype), preferred_element_type=jnp.float32)
    h = jnp.maximum(h + b2_ref[...], 0.0)
    # layer 3: (16, 64) @ (64, tb); only row 0 of w3T is real (rest zero-padded)
    v = jnp.dot(w3T_ref[...], h.astype(w3T_ref.dtype), preferred_element_type=jnp.float32)
    # lane-dense packed result: one scalar per batch row, 4 B/row writeback
    o_ref[...] = (v[0:1, :] + b3_ref[...]).astype(o_ref.dtype)


def pack_params(params, *, use_bf16=True):
    """One-time parameter prep: transpose, bf16-cast, pad l3 to 16 sublane rows."""
    w1, b1, w2, b2, w3, b3 = params
    cdt = jnp.bfloat16 if use_bf16 else w1.dtype
    w1T = w1.T.astype(cdt)                                   # (64, D)
    w2T = w2.T.astype(cdt)                                   # (64, 64)
    w3T = jnp.zeros((16, w3.shape[0]), cdt).at[0, :].set(w3[:, 0].astype(cdt))  # (16, 64)
    b1c = b1.reshape(-1, 1).astype(jnp.float32)              # (64, 1)
    b2c = b2.reshape(-1, 1).astype(jnp.float32)              # (64, 1)
    b3c = b3.reshape(1, 1).astype(jnp.float32)                # (1, 1)
    return (w1T, b1c, w2T, b2c, w3T, b3c)


@partial(jax.jit, static_argnames=("block_b",))
def value_forward(x, packed, *, block_b=1024):
    """x: (B, D) float32. Returns (B,) float32 (PyTorch-style squeeze of (B, 1))."""
    w1T, b1c, w2T, b2c, w3T, b3c = packed
    B, D = x.shape
    H = w1T.shape[0]

    # --- batch tiling: large tiles for DMA/overhead amortization; >=2 balanced
    # tiles when B > block_b so v7x's two TensorCores split the batch. --------
    if B > block_b:
        n_tiles = pl.cdiv(B, block_b)
        tb = pl.cdiv(pl.cdiv(B, n_tiles), LANES) * LANES
    else:
        n_tiles = 1
        tb = pl.cdiv(B, LANES) * LANES
    bp = n_tiles * tb

    # x^T: batch into the lane dim (enables the lane-dense packed output).
    # Tiny op over x only; fuses with the optional pad under jit.
    xT = x.T
    if bp != B:
        xT = jnp.pad(xT, ((0, 0), (0, bp - B)))

    flops = 2 * bp * (D * H + H * H + H * w3T.shape[0])
    bytes_accessed = (
        xT.size * xT.dtype.itemsize            # activations in
        + bp * 4                               # packed f32 output (4 B/row)
        + sum(a.size * a.dtype.itemsize for a in packed)
    )

    # Parameters use constant index_maps -> VMEM-resident across grid steps.
    # (They total ~13 KB; the extra pipeline buffer on them is negligible.)
    const = lambda a: pl.BlockSpec(a.shape, lambda i: (0, 0))

    out = pl.pallas_call(
        value_kernel,
        out_shape=jax.ShapeDtypeStruct((1, bp), jnp.float32),
        grid=(bp // tb,),
        in_specs=[
            pl.BlockSpec((D, tb), lambda i: (0, i)),   # batch-tiled x^T (pipelined)
            const(w1T), const(b1c),
            const(w2T), const(b2c),
            const(w3T), const(b3c),
        ],
        out_specs=pl.BlockSpec((1, tb), lambda i: (0, i)),   # lane-dense packed rows
        compiler_params=pltpu.CompilerParams(
            dimension_semantics=("parallel",)),              # megacore split on v7x
        cost_estimate=pl.CostEstimate(
            flops=flops, transcendentals=0, bytes_accessed=bytes_accessed),
    )(xT, w1T, b1c, w2T, b2c, w3T, b3c)

    # Drop padded lanes; PyTorch .squeeze() of (B, 1) -> (B,)
    return out[0, :B]


def init_params(key, input_dim, hidden=64):
    """Deterministic PyTorch-style (uniform fan-in) init."""
    def linear_init(k, fan_in, fan_out):
        kw, kb = jax.random.split(k)
        bound = 1.0 / jnp.sqrt(fan_in)
        w = jax.random.uniform(kw, (fan_in, fan_out), jnp.float32, -bound, bound)
        b = jax.random.uniform(kb, (1, fan_out), jnp.float32, -bound, bound)
        return w, b

    k1, k2, k3 = jax.random.split(key, 3)
    w1, b1 = linear_init(k1, input_dim, hidden)
    w2, b2 = linear_init(k2, hidden, hidden)
    w3, b3 = linear_init(k3, hidden, 1)
    return (w1, b1, w2, b2, w3, b3)


def value_reference_f32(x, params):
    w1, b1, w2, b2, w3, b3 = params
    h = jnp.maximum(x @ w1 + b1, 0.0)
    h = jnp.maximum(h @ w2 + b2, 0.0)
    return (h @ w3 + b3)[:, 0]


def value_reference_bf16(x, params):
    """Same bf16-input / f32-accumulate math as the kernel, in plain JAX."""
    w1, b1, w2, b2, w3, b3 = params
    dt = jnp.bfloat16
    h = jnp.dot(x.astype(dt), w1.astype(dt), preferred_element_type=jnp.float32)
    h = jnp.maximum(h + b1, 0.0)
    h = jnp.dot(h.astype(dt), w2.astype(dt), preferred_element_type=jnp.float32)
    h = jnp.maximum(h + b2, 0.0)
    out = jnp.dot(h.astype(dt), w3.astype(dt), preferred_element_type=jnp.float32) + b3
    return out[:, 0]


if __name__ == "__main__":
    key = jax.random.PRNGKey(0)
    kx, kp, kx2 = jax.random.split(key, 3)

    batch, input_dim = 8, 16  # observation_space.shape[0] = 16
    x = jax.random.normal(kx, (batch, input_dim), jnp.float32)
    params = init_params(kp, input_dim)
    packed = pack_params(params)

    # --- small-batch case (single grid step, single lane-dense tile) ---------
    out = jax.block_until_ready(value_forward(x, packed))
    assert out.shape == (batch,)
    assert jnp.allclose(out, value_reference_bf16(x, params), atol=1e-2, rtol=1e-2)
    assert jnp.allclose(out, value_reference_f32(x, params), atol=5e-2, rtol=5e-2)

    # --- larger ragged batch: multi-tile grid, padding, parallel axis --------
    batch2 = 600
    x2 = jax.random.normal(kx2, (batch2, input_dim), jnp.float32)
    out2 = jax.block_until_ready(value_forward(x2, packed, block_b=256))
    assert out2.shape == (batch2,)
    assert jnp.allclose(out2, value_reference_bf16(x2, params), atol=1e-2, rtol=1e-2)
    assert jnp.allclose(out2, value_reference_f32(x2, params), atol=5e-2, rtol=5e-2)

    print("KERNEL_OK")
</pallas_src>

<mosaic_0001>
module attributes {stable_mosaic.version = 11 : i64} {
  func.func @value_kernel(%arg0: i32, %arg1: memref<16x128xf32, #tpu.memory_space<vmem>>, %arg2: memref<64x16xbf16, #tpu.memory_space<vmem>>, %arg3: memref<64x1xf32, #tpu.memory_space<vmem>>, %arg4: memref<64x64xbf16, #tpu.memory_space<vmem>>, %arg5: memref<64x1xf32, #tpu.memory_space<vmem>>, %arg6: memref<16x64xbf16, #tpu.memory_space<vmem>>, %arg7: memref<1x1xf32, #tpu.memory_space<vmem>>, %arg8: memref<1x128xf32, #tpu.memory_space<vmem>>) attributes {dimension_semantics = [#tpu.dimension_semantics<parallel>], iteration_bounds = array<i64: 1>, scalar_prefetch = 0 : i64, scratch_operands = 0 : i64, tpu.core_type = #tpu.core_type<tc>, window_params = [{transform_indices = @transform_0, window_bounds = array<i64: 16, 128>}, {pipeline_mode = #tpu.pipeline_mode<synchronous>, transform_indices = @transform_1, window_bounds = array<i64: 64, 16>}, {pipeline_mode = #tpu.pipeline_mode<synchronous>, transform_indices = @transform_2, window_bounds = array<i64: 64, 1>}, {pipeline_mode = #tpu.pipeline_mode<synchronous>, transform_indices = @transform_3, window_bounds = array<i64: 64, 64>}, {pipeline_mode = #tpu.pipeline_mode<synchronous>, transform_indices = @transform_4, window_bounds = array<i64: 64, 1>}, {pipeline_mode = #tpu.pipeline_mode<synchronous>, transform_indices = @transform_5, window_bounds = array<i64: 16, 64>}, {pipeline_mode = #tpu.pipeline_mode<synchronous>, transform_indices = @transform_6, window_bounds = array<i64: 1, 1>}, {transform_indices = @transform_7, window_bounds = array<i64: 1, 128>}]} {
    %c0 = arith.constant 0 : index
    %c0_0 = arith.constant 0 : index
    %0 = vector.load %arg1[%c0, %c0_0] : memref<16x128xf32, #tpu.memory_space<vmem>>, vector<16x128xf32>
    %1 = arith.truncf %0 : vector<16x128xf32> to vector<16x128xbf16>
    %c0_1 = arith.constant 0 : index
    %c0_2 = arith.constant 0 : index
    %2 = vector.load %arg2[%c0_1, %c0_2] : memref<64x16xbf16, #tpu.memory_space<vmem>>, vector<64x16xbf16>
    %cst = arith.constant dense<0.000000e+00> : vector<64x128xf32>
    %3 = tpu.matmul %2, %1, %cst {dimension_numbers = #tpu.dot_dimension_numbers<[1], [0], [0], [1], [0, 0, 1, 1], [], []>} : vector<64x16xbf16>, vector<16x128xbf16>, vector<64x128xf32> -> vector<64x128xf32>
    %c0_3 = arith.constant 0 : index
    %c0_4 = arith.constant 0 : index
    %4 = vector.load %arg3[%c0_3, %c0_4] : memref<64x1xf32, #tpu.memory_space<vmem>>, vector<64x1xf32>
    %5 = vector.broadcast %4 : vector<64x1xf32> to vector<64x128xf32>
    %6 = arith.addf %3, %5 : vector<64x128xf32>
    %cst_5 = arith.constant 0.000000e+00 : f32
    %7 = vector.broadcast %cst_5 : f32 to vector<64x128xf32>
    %8 = arith.maximumf %6, %7 : vector<64x128xf32>
    %c0_6 = arith.constant 0 : index
    %c0_7 = arith.constant 0 : index
    %9 = vector.load %arg4[%c0_6, %c0_7] : memref<64x64xbf16, #tpu.memory_space<vmem>>, vector<64x64xbf16>
    %10 = arith.truncf %8 : vector<64x128xf32> to vector<64x128xbf16>
    %cst_8 = arith.constant dense<0.000000e+00> : vector<64x128xf32>
    %11 = tpu.matmul %9, %10, %cst_8 {dimension_numbers = #tpu.dot_dimension_numbers<[1], [0], [0], [1], [0, 0, 1, 1], [], []>} : vector<64x64xbf16>, vector<64x128xbf16>, vector<64x128xf32> -> vector<64x128xf32>
    %c0_9 = arith.constant 0 : index
    %c0_10 = arith.constant 0 : index
    %12 = vector.load %arg5[%c0_9, %c0_10] : memref<64x1xf32, #tpu.memory_space<vmem>>, vector<64x1xf32>
    %13 = vector.broadcast %12 : vector<64x1xf32> to vector<64x128xf32>
    %14 = arith.addf %11, %13 : vector<64x128xf32>
    %cst_11 = arith.constant 0.000000e+00 : f32
    %15 = vector.broadcast %cst_11 : f32 to vector<64x128xf32>
    %16 = arith.maximumf %14, %15 : vector<64x128xf32>
    %c0_12 = arith.constant 0 : index
    %c0_13 = arith.constant 0 : index
    %17 = vector.load %arg6[%c0_12, %c0_13] : memref<16x64xbf16, #tpu.memory_space<vmem>>, vector<16x64xbf16>
    %18 = arith.truncf %16 : vector<64x128xf32> to vector<64x128xbf16>
    %cst_14 = arith.constant dense<0.000000e+00> : vector<16x128xf32>
    %19 = tpu.matmul %17, %18, %cst_14 {dimension_numbers = #tpu.dot_dimension_numbers<[1], [0], [0], [1], [0, 0, 1, 1], [], []>} : vector<16x64xbf16>, vector<64x128xbf16>, vector<16x128xf32> -> vector<16x128xf32>
    %20 = vector.extract_strided_slice %19 {offsets = [0, 0], sizes = [1, 128], strides = [1, 1]} : vector<16x128xf32> to vector<1x128xf32>
    %c0_15 = arith.constant 0 : index
    %c0_16 = arith.constant 0 : index
    %21 = vector.load %arg7[%c0_15, %c0_16] : memref<1x1xf32, #tpu.memory_space<vmem>>, vector<1x1xf32>
    %22 = vector.broadcast %21 : vector<1x1xf32> to vector<1x128xf32>
    %23 = arith.addf %20, %22 : vector<1x128xf32>
    %c0_17 = arith.constant 0 : index
    %c0_18 = arith.constant 0 : index
    %24 = vector.load %arg8[%c0_17, %c0_18] : memref<1x128xf32, #tpu.memory_space<vmem>>, vector<1x128xf32>
    tpu.vector_store %arg8[%c0_17, %c0_18], %23 {strides = array<i32>} : memref<1x128xf32, #tpu.memory_space<vmem>>, vector<1x128xf32>,
    return
  }
  func.func @transform_0(%arg0: i32) -> (i32, i32) {
    %c0_i32 = arith.constant 0 : i32
    %c0_i32_0 = arith.constant 0 : i32
    return %c0_i32, %arg0 : i32, i32
  }
  func.func @transform_1(%arg0: i32) -> (i32, i32) {
    %c0_i32 = arith.constant 0 : i32
    %c0_i32_0 = arith.constant 0 : i32
    %c0_i32_1 = arith.constant 0 : i32
    return %c0_i32, %c0_i32_0 : i32, i32
  }
  func.func @transform_2(%arg0: i32) -> (i32, i32) {
    %c0_i32 = arith.constant 0 : i32
    %c0_i32_0 = arith.constant 0 : i32
    %c0_i32_1 = arith.constant 0 : i32
    return %c0_i32, %c0_i32_0 : i32, i32
  }
  func.func @transform_3(%arg0: i32) -> (i32, i32) {
    %c0_i32 = arith.constant 0 : i32
    %c0_i32_0 = arith.constant 0 : i32
    %c0_i32_1 = arith.constant 0 : i32
    return %c0_i32, %c0_i32_0 : i32, i32
  }
  func.func @transform_4(%arg0: i32) -> (i32, i32) {
    %c0_i32 = arith.constant 0 : i32
    %c0_i32_0 = arith.constant 0 : i32
    %c0_i32_1 = arith.constant 0 : i32
    return %c0_i32, %c0_i32_0 : i32, i32
  }
  func.func @transform_5(%arg0: i32) -> (i32, i32) {
    %c0_i32 = arith.constant 0 : i32
    %c0_i32_0 = arith.constant 0 : i32
    %c0_i32_1 = arith.constant 0 : i32
    return %c0_i32, %c0_i32_0 : i32, i32
  }
  func.func @transform_6(%arg0: i32) -> (i32, i32) {
    %c0_i32 = arith.constant 0 : i32
    %c0_i32_0 = arith.constant 0 : i32
    %c0_i32_1 = arith.constant 0 : i32
    return %c0_i32, %c0_i32_0 : i32, i32
  }
  func.func @transform_7(%arg0: i32) -> (i32, i32) {
    %c0_i32 = arith.constant 0 : i32
    %c0_i32_0 = arith.constant 0 : i32
    return %c0_i32, %arg0 : i32, i32
  }
}

</mosaic_0001>

<bundles_post_ra>
// kernel: value_forward.1
= control target key start
LH: loop header
LB: loop body
LE: loop exit
PB: predicated region body
PF: predicated region fallthrough
CT: control target
= control target key end

     0   :  { %vm108_vm0 = vcmask 130048   ;;  %v518_v2 = vmov 0   ;;  %vm274_vm1 = vcmask 523264   ;;  %vm520_vm2 = vmmov 0   ;;  %s657_s0 = inlined_call_operand.vmem [shape: f32[16,128], index: 0, kind: input, shape index: {}]   ;;  %s658_s1 = inlined_call_operand.vmem [shape: bf16[64,16], index: 1, kind: input, shape index: {}]   ;;  %s659_s6 = inlined_call_operand.<no memory space> [shape: f32[1,1], index: 6, kind: input, shape index: {}]   ;;  %s660_s2 = inlined_call_operand.vmem [shape: f32[64,1], index: 2, kind: input, shape index: {}]   ;;  %s661_s4 = inlined_call_operand.vmem [shape: f32[64,1], index: 4, kind: input, shape index: {}]   ;;  %s662_s3 = inlined_call_operand.vmem [shape: bf16[64,64], index: 3, kind: input, shape index: {}]   ;;  %s663_s5 = inlined_call_operand.vmem [shape: bf16[16,64], index: 5, kind: input, shape index: {}]   ;;  %s664_s7 = inlined_call_operand.vmem [shape: f32[1,128], index: 7, kind: output, shape index: {}]  }
   0x1   :  { %v29_v0 = vld [vmem:[%s657_s0] sm:$0xff]  ;;  %v30_v1 = vld [vmem:[%s657_s0 + $0x8] sm:$0xff]  ;;  %507 = vset.pattern.permute.xlu0 %v518_v2  ;;  %508 = vset.pattern.permute.xlu1 %v518_v2  ;;  %v12_v3 = vstv %s659_s6  ;;  %v511_v7 = vld [vmem:[%s658_s1 + $0x10] sm:$0xff]   ;;  %v519_v2 = vmov 0.0  }
   0x2   :  { %v31_v4 = vpack.c.bf16 %v30_v1, %v29_v0  ;;  %v509_v5 = vld [vmem:[%s658_s1] sm:$0xff]   ;;  %13 = vst [vmem:[#allocation2] sm:$0x1] %v12_v3  ;;  %v510_v6 = vld [vmem:[%s658_s1 + $0x8] sm:$0xff]   ;;  %v46_v8 = vld [vmem:[%s660_s2 + $0x30] sm:$0xff] }
   0x3   :  { %468 = vmatprep.mubr.msk.bf16.mxu0 %vm108_vm0, %v509_v5  ;;  %80 = vperm.xlu0 %507, %v46_v8   ;;  %v44_v9 = vld [vmem:[%s660_s2 + $0x20] sm:$0xff]  ;;  %v47_v10 = vld [vmem:[%s660_s2 + $0x38] sm:$0xff]  ;;  %v45_v11 = vld [vmem:[%s660_s2 + $0x28] sm:$0xff] }
   0x4   :  { %466 = vmatprep.subr.bf16.mxu0 %v31_v4  ;;  %70 = vperm.xlu1 %508, %v44_v9   ;;  %v42_v12 = vld [vmem:[%s660_s2 + $0x10] sm:$0xff]  ;;  %v512_v13 = vld [vmem:[%s658_s1 + $0x18] sm:$0xff]   ;;  %v40_v15 = vld [vmem:[%s660_s2] sm:$0xff] }
   0x5   :  { %467 = vmatpush3.bf16.msra.mxu0 %v31_v4  ;;  %v43_v14 = vld [vmem:[%s660_s2 + $0x18] sm:$0xff]  ;;  %v41_v16 = vld [vmem:[%s660_s2 + $0x8] sm:$0xff]  ;;  %v212_v17 = vld [vmem:[%s661_s4 + $0x30] sm:$0xff] }
   0x6   :  { %v213_v18 = vld [vmem:[%s661_s4 + $0x38] sm:$0xff]  ;;  %v210_v19 = vld [vmem:[%s661_s4 + $0x20] sm:$0xff]  ;;  %v211_v20 = vld [vmem:[%s661_s4 + $0x28] sm:$0xff]  ;;  %492 = vmatprep.subr.bf16.mxu0 %v519_v2 }
   0x7   :  { %85 = vperm.xlu0 %507, %v47_v10   ;;  %v208_v21 = vld [vmem:[%s661_s4 + $0x10] sm:$0xff]  ;;  %v209_v22 = vld [vmem:[%s661_s4 + $0x18] sm:$0xff]  ;;  %v206_v23 = vld [vmem:[%s661_s4] sm:$0xff] }
   0x8   :  { %469 = vmatmul.mubr.msk.bf16.vlgmr.msra.gmra.mxu0 %vm108_vm0, %v510_v6  ;;  %75 = vperm.xlu1 %508, %v45_v11   ;;  %v207_v24 = vld [vmem:[%s661_s4 + $0x8] sm:$0xff]  ;;  %v513_v26 = vld [vmem:[%s662_s3] sm:$0xff]   ;;  %v515_v0 = vld [vmem:[%s662_s3 + $0x10] sm:$0xff]  }
   0x9   :  { %472 = vmatprep.mubr.msk.bf16.mxu0 %vm108_vm0, %v511_v7  ;;  %v414_v25 = vld [vmem:[#allocation2] sm:$0x1]  ;;  %484 = vmatprep.mubr.msk.bf16.mxu1 %vm274_vm1, %v513_v26  ;;  %v514_v63 = vld [vmem:[%s662_s3 + $0x8] sm:$0xff]   ;;  %v516_v1 = vld [vmem:[%s662_s3 + $0x18] sm:$0xff]  }
   0xb   :  { %60 = vperm.xlu0 %507, %v42_v12  }
   0xc   :  { %65 = vperm.xlu1 %508, %v43_v14  }
   0xf   :  { %50 = vperm.xlu0 %507, %v40_v15  }
  0x10   :  { %473 = vmatmul.mubr.msk.bf16.gmra.mxu0 %vm108_vm0, %v512_v13  ;;  %55 = vperm.xlu1 %508, %v41_v16  }
  0x11   :  { %500 = vmatprep.mubr.msk.bf16.mxu0 %vm520_vm2, %v519_v2 }
  0x13   :  { %246 = vperm.xlu0 %507, %v212_v17  }
  0x14   :  { %251 = vperm.xlu1 %508, %v213_v18  }
  0x17   :  { %236 = vperm.xlu0 %507, %v210_v19  }
  0x18   :  { %241 = vperm.xlu1 %508, %v211_v20  }
  0x1b   :  { %226 = vperm.xlu0 %507, %v208_v21  }
  0x1c   :  { %231 = vperm.xlu1 %508, %v209_v22  }
  0x1f   :  { %216 = vperm.xlu0 %507, %v206_v23  }
  0x20   :  { %221 = vperm.xlu1 %508, %v207_v24  }
  0x23   :  { %417 = vperm.xlu0 %507, %v414_v25  }
  0x7e   :  { %v81_v29 = vpop.permute.xlu0 %80 }
  0x7f   :  { %v71_v27 = vpop.permute.xlu1 %70 }
  0x82   :  { %v86_v34 = vpop.permute.xlu0 %85 }
  0x83   :  { %v76_v32 = vpop.permute.xlu1 %75 }
  0x86   :  { %v61_v42 = vpop.permute.xlu0 %60 }
  0x87   :  { %v66_v38 = vpop.permute.xlu1 %65 }
  0x8a   :  { %v51_v56 = vpop.permute.xlu0 %50 }
  0x8b   :  { %v56_v52 = vpop.permute.xlu1 %55 }
  0x8e   :  { %v247_v6 = vpop.permute.xlu0 %246 }
  0x8f   :  { %v252_v4 = vpop.permute.xlu1 %251 }
  0x92   :  { %v237_v11 = vpop.permute.xlu0 %236 }
  0x93   :  { %v242_v9 = vpop.permute.xlu1 %241 }
  0x96   :  { %v227_v22 = vpop.permute.xlu0 %226 }
  0x97   :  { %v232_v16 = vpop.permute.xlu1 %231 }
  0xc8   :  { %v470_v28 = vpop.f32.mrf.mxu0 }
  0xc9   :  { %v164_v48 = vadd.f32 %v470_v28, %v61_v42  ;;  %v222_v28 = vpop.permute.xlu1 %221 }
  0xca   :  { %v155_v30 = vpop.f32.mrf.mxu0 }
  0xcb   :  { %v188_v57 = vmax.f32 %v164_v48, 0.0  ;;  %v156_v58 = vadd.f32 %v155_v30, %v51_v56 }
  0xcc   :  { %v471_v31 = vpop.f32.mrf.mxu0 }
  0xcd   :  { %v167_v44 = vadd.f32 %v471_v31, %v66_v38  ;;  %v186_v61 = vmax.f32 %v156_v58, 0.0 }
  0xce   :  { %v158_v33 = vpop.f32.mrf.mxu0 }
  0xcf   :  { %v189_v53 = vmax.f32 %v167_v44, 0.0  ;;  %v159_v54 = vadd.f32 %v158_v33, %v56_v52 }
  0xd0   :  { %v474_v35 = vpop.f32.mrf.mxu0 }
  0xd1   :  { %v180_v37 = vadd.f32 %v474_v35, %v81_v29  ;;  %v203_v59 = vpack.c.bf16 %v189_v53, %v188_v57  ;;  %v187_v60 = vmax.f32 %v159_v54, 0.0 }
  0xd2   :  { %v171_v36 = vpop.f32.mrf.mxu0 }
  0xd3   :  { %v172_v40 = vadd.f32 %v171_v36, %v71_v27  ;;  %v192_v45 = vmax.f32 %v180_v37, 0.0  ;;  %v202_v62 = vpack.c.bf16 %v187_v60, %v186_v61 }
  0xd4   :  { %v475_v39 = vpop.f32.mrf.mxu0 }
  0xd5   :  { %v183_v41 = vadd.f32 %v475_v39, %v86_v34  ;;  %v190_v49 = vmax.f32 %v172_v40, 0.0  ;;  %v517_v39 = vld [vmem:[%s663_s5] sm:$0xff]   ;;  %v420_v40 = vlaneseq }
  0xd6   :  { %v174_v43 = vpop.f32.mrf.mxu0 }
  0xd7   :  { %v193_v46 = vmax.f32 %v183_v41, 0.0  ;;  %v175_v47 = vadd.f32 %v174_v43, %v76_v32  ;;  %v217_v32 = vpop.permute.xlu0 %216  ;;  %v421_v41 = vshrl.u32 %v420_v40, 7 }
  0xd9   :  { %v191_v50 = vmax.f32 %v175_v47, 0.0  ;;  %v205_v51 = vpack.c.bf16 %v193_v46, %v192_v45  ;;  %v422_v42 = vsub.s32 0, %v421_v41 }
  0xdb   :  { %v204_v55 = vpack.c.bf16 %v191_v50, %v190_v49  ;;  %476 = vmatprep.subr.bf16.mxu1 %v205_v51  ;;  %v418_v43 = vpop.permute.xlu0 %417 }
  0xdc   :  { %477 = vmatpush3.bf16.msra.mxu1 %v205_v51  ;;  %v423_v44 = vrot.slane %v418_v43, %v422_v42 }
  0xdd   :  { %478 = vmatprep.subr.bf16.mxu1 %v204_v55 }
  0xe0   :  { %479 = vmatpush3.bf16.msra.mxu1 %v204_v55 }
  0xe1   :  { %480 = vmatprep.subr.bf16.mxu1 %v203_v59 }
  0xe4   :  { %481 = vmatpush3.bf16.msra.mxu1 %v203_v59 }
  0xe5   :  { %482 = vmatprep.subr.bf16.mxu1 %v202_v62 }
  0xe8   :  { %483 = vmatpush3.bf16.msra.mxu1 %v202_v62 }
  0xeb   :  { %485 = vmatmul.mubr.msk.bf16.vlgmr.msra.gmra.mxu1 %vm274_vm1, %v514_v63 }
  0xec   :  { %488 = vmatprep.mubr.msk.bf16.mxu1 %vm274_vm1, %v515_v0 }
  0xf3   :  { %489 = vmatmul.mubr.msk.bf16.gmra.mxu1 %vm274_vm1, %v516_v1 }
 0x1ab   :  { %v486_v3 = vpop.f32.mrf.mxu1 }
 0x1ac   :  { %v330_v26 = vadd.f32 %v486_v3, %v227_v22 }
 0x1ad   :  { %v321_v5 = vpop.f32.mrf.mxu1 }
 0x1ae   :  { %v354_v33 = vmax.f32 %v330_v26, 0.0  ;;  %v322_v34 = vadd.f32 %v321_v5, %v217_v32 }
 0x1af   :  { %v487_v7 = vpop.f32.mrf.mxu1 }
 0x1b0   :  { %v333_v23 = vadd.f32 %v487_v7, %v232_v16  ;;  %v352_v37 = vmax.f32 %v322_v34, 0.0 }
 0x1b1   :  { %v324_v8 = vpop.f32.mrf.mxu1 }
 0x1b2   :  { %v355_v29 = vmax.f32 %v333_v23, 0.0  ;;  %v325_v30 = vadd.f32 %v324_v8, %v222_v28 }
 0x1b3   :  { %v490_v10 = vpop.f32.mrf.mxu1 }
 0x1b4   :  { %v346_v13 = vadd.f32 %v490_v10, %v247_v6  ;;  %v363_v35 = vpack.c.bf16 %v355_v29, %v354_v33  ;;  %v353_v36 = vmax.f32 %v325_v30, 0.0 }
 0x1b5   :  { %v337_v12 = vpop.f32.mrf.mxu1 }
 0x1b6   :  { %v358_v18 = vmax.f32 %v346_v13, 0.0  ;;  %v338_v19 = vadd.f32 %v337_v12, %v237_v11  ;;  %v362_v38 = vpack.c.bf16 %v353_v36, %v352_v37 }
 0x1b7   :  { %v491_v14 = vpop.f32.mrf.mxu1 }
 0x1b8   :  { %v349_v15 = vadd.f32 %v491_v14, %v252_v4  ;;  %v356_v27 = vmax.f32 %v338_v19, 0.0 }
 0x1b9   :  { %v340_v17 = vpop.f32.mrf.mxu1 }
 0x1ba   :  { %v359_v20 = vmax.f32 %v349_v15, 0.0  ;;  %v341_v21 = vadd.f32 %v340_v17, %v242_v9 }
 0x1bc   :  { %v365_v24 = vpack.c.bf16 %v359_v20, %v358_v18  ;;  %v357_v25 = vmax.f32 %v341_v21, 0.0 }
 0x1be   :  { %493 = vmatpush3.bf16.msra.mxu0 %v365_v24  ;;  %v364_v31 = vpack.c.bf16 %v357_v25, %v356_v27 }
 0x1bf   :  { %494 = vmatprep.subr.bf16.mxu0 %v519_v2 }
 0x1c2   :  { %495 = vmatpush3.bf16.msra.mxu0 %v364_v31 }
 0x1c3   :  { %496 = vmatprep.subr.bf16.mxu0 %v519_v2 }
 0x1c6   :  { %497 = vmatpush3.bf16.msra.mxu0 %v363_v35 }
 0x1c7   :  { %498 = vmatprep.subr.bf16.mxu0 %v519_v2 }
 0x1ca   :  { %499 = vmatpush3.bf16.msra.mxu0 %v362_v38 }
 0x1cd   :  { %501 = vmatmul.mubr.msk.bf16.vlgmr.msra.gmra.mxu0 %vm274_vm1, %v517_v39 }
 0x28d   :  { %v408_v45 = vpop.f32.mrf.mxu0 }
 0x28e   :  { %v424_v46 = vadd.f32 %v423_v44, %v408_v45 }
 0x28f   :  { %v502_v47 = vpop.f32.mrf.mxu0 }
 0x290   :  { %425 = vst [vmem:[%s664_s7] sm:$0x1] %v424_v46 }
 0x291   :  { %v411_v48 = vpop.f32.mrf.mxu0 }
 0x293   :  { %v503_v49 = vpop.f32.mrf.mxu0 }

</bundles_post_ra>
